<compile_context>
chip_gen: v6e
topology: v6e:2x2x1
jax: 0.10.0
libtpu: 0.0.40
codegen_flags: <defaults>
</compile_context>

<pallas_src>
import jax
import jax.numpy as jnp
from jax.experimental import pallas as pl
from jax.experimental.pallas import tpu as pltpu

# ----- module hyper-parameters (PyTorch defaults) ---------------------------
NUM_CHANNELS = 1
EMB_SIZE = 256
PATCH_SIZE = 125 // 5          # 25
HID = EMB_SIZE // 4            # 64
IN_FEAT = NUM_CHANNELS * PATCH_SIZE  # 25


def _round_up(a, m):
    return ((a + m - 1) // m) * m


def _cdiv(a, b):
    return (a + b - 1) // b


# ----- Pallas kernel: autoencoder forward on one (batch, token-tile) --------
def _autoencoder_kernel(x_ref, w1_ref, b1_ref, w2_ref, b2_ref,
                        w3_ref, b3_ref, w4_ref, b4_ref,
                        recon_ref, z_ref):
    x = x_ref[0]                                                   # (TT, C*P)

    # encoder[0]: Conv1d(C, HID, k=P, stride=P)  == per-patch matmul
    h1 = jnp.dot(x, w1_ref[...], preferred_element_type=jnp.float32) + b1_ref[...]
    h1 = jnp.maximum(h1, 0.0)                                      # ReLU

    # encoder[2]: Conv1d(HID, EMB, k=1)  == matmul
    z = jnp.dot(h1, w2_ref[...], preferred_element_type=jnp.float32) + b2_ref[...]
    z = jnp.maximum(z, 0.0)                                        # ReLU
    # Store z directly in the PyTorch (B, EMB, T) layout; the XLU transpose rides
    # a different issue slot than the MXU/VPU work and saves a wrapper-side
    # full-HBM transpose of the largest tensor.
    z_ref[0] = z.T                                                 # (EMB, TT)

    # decoder[0]: Conv1d(EMB, HID, k=1)  == matmul
    d1 = jnp.dot(z, w3_ref[...], preferred_element_type=jnp.float32) + b3_ref[...]
    d1 = jnp.maximum(d1, 0.0)                                      # ReLU

    # decoder[2]: ConvTranspose1d(HID, C, k=P, stride=P)  == matmul to patches
    recon_ref[0] = (jnp.dot(d1, w4_ref[...],
                            preferred_element_type=jnp.float32) + b4_ref[...])


def autoencoder_forward(x, params, *, token_tile=2048):
    """x: (B, C, L) float32.  Returns (x_reconstructed (B, C, T*P), z (B, EMB, T))."""
    W1, b1, W2, b2, W3, b3, W4, b4 = params
    B, C, L = x.shape
    P = PATCH_SIZE
    T = L // P
    CP = C * P
    EMB = EMB_SIZE

    # NCL -> non-overlapping patches (B, T, C*P); a pure reshape for C == 1.
    # (Trailing samples beyond T*P are dropped, matching strided Conv1d.)
    x_tok = (x[:, :, :T * P].reshape(B, C, T, P)
             .transpose(0, 2, 1, 3).reshape(B, T, CP))

    # --- token-tile selection -----------------------------------------------
    pad_T = False
    if T < 128 and T % 8 != 0:
        # Degenerate sequence: pad tokens to a multiple of 8 and slice after.
        # Extra HBM traffic is negligible at this size and it keeps every
        # in-kernel shape on well-trodden (8,128)-aligned paths.
        Tp = _round_up(T, 8)
        TT = Tp
        pad_T = True
        x_tok = jnp.pad(x_tok, ((0, 0), (0, Tp - T), (0, 0)))
    elif T <= token_tile and T % 8 == 0 and not (B == 1 and T > 256):
        # Exact single tile per batch: block dims == full array dims, so no
        # padding and no post-kernel slicing (avoids an extra full HBM pass
        # over z, the dominant stream).  If T is 128-aligned the z stores are
        # fully lane-dense; otherwise only the tail vregs are masked.
        Tp = T
        TT = T
    else:
        # General tiled path: 128-multiple tiles (lane-dense z stores), grid
        # from cdiv, Pallas masks the partial edge block -> no wrapper pad or
        # slice.  With B == 1 force >= 2 token tiles so both TensorCores of a
        # dual-core chip (v7x) get work.
        Tp = T
        min_tiles = 2 if B == 1 else 1
        TT = max(128, min(token_tile, (T // min_tiles) // 128 * 128))

    n_t_tiles = _cdiv(Tp, TT)
    grid = (B, n_t_tiles)

    tok_spec = lambda: pl.BlockSpec((1, TT, CP), lambda b, t: (b, t, 0))
    w_spec = lambda arr: pl.BlockSpec(arr.shape, lambda b, t: (0, 0))
    z_spec = pl.BlockSpec((1, EMB, TT), lambda b, t: (b, 0, t))

    n_tok = B * Tp
    flops = 2 * n_tok * (CP * HID + HID * EMB + EMB * HID + HID * CP)
    bytes_accessed = 4 * (n_tok * (2 * CP + EMB)
                          + (CP * HID + HID * EMB + EMB * HID + HID * CP)
                          + 2 * HID + EMB + CP)
    cost = pl.CostEstimate(flops=flops, transcendentals=0,
                           bytes_accessed=bytes_accessed)

    recon_tok, z_out = pl.pallas_call(
        _autoencoder_kernel,
        out_shape=(jax.ShapeDtypeStruct((B, Tp, CP), jnp.float32),
                   jax.ShapeDtypeStruct((B, EMB, Tp), jnp.float32)),
        grid=grid,
        in_specs=[tok_spec(),
                  w_spec(W1), w_spec(b1),
                  w_spec(W2), w_spec(b2),
                  w_spec(W3), w_spec(b3),
                  w_spec(W4), w_spec(b4)],
        out_specs=[tok_spec(), z_spec],
        compiler_params=pltpu.CompilerParams(
            dimension_semantics=("parallel", "parallel"),
            # v5e's 16 MiB scoped-VMEM default would silently cap the
            # 2048-token tile; 48 MiB keeps headroom on v7x (64 MiB physical).
            vmem_limit_bytes=48 * 1024 * 1024),
        cost_estimate=cost,
    )(x_tok, W1, b1, W2, b2, W3, b3, W4, b4)

    if pad_T:   # only the degenerate small-T path pays this (negligible)
        recon_tok = recon_tok[:, :T, :]
        z_out = z_out[:, :, :T]

    # patches back to (B, C, T*P); pure reshape for C == 1.
    x_reconstructed = (recon_tok.reshape(B, T, C, P)
                                .transpose(0, 2, 1, 3)
                                .reshape(B, C, T * P))
    return x_reconstructed, z_out                                   # z: (B, EMB, T)


# ----- deterministic parameter init (PyTorch conv shapes, matmul form) ------
def init_params(key):
    ks = jax.random.split(key, 8)
    u = lambda k, shape, bound: jax.random.uniform(k, shape, jnp.float32,
                                                   -bound, bound)
    # encoder Conv1d(C, HID, k=P): torch weight (HID, C, P) -> W1 (C*P, HID)
    W1 = u(ks[0], (IN_FEAT, HID), 1.0 / (IN_FEAT ** 0.5))
    b1 = u(ks[1], (1, HID), 1.0 / (IN_FEAT ** 0.5))
    # encoder Conv1d(HID, EMB, k=1): torch weight (EMB, HID, 1) -> W2 (HID, EMB)
    W2 = u(ks[2], (HID, EMB_SIZE), 1.0 / (HID ** 0.5))
    b2 = u(ks[3], (1, EMB_SIZE), 1.0 / (HID ** 0.5))
    # decoder Conv1d(EMB, HID, k=1): torch weight (HID, EMB, 1) -> W3 (EMB, HID)
    W3 = u(ks[4], (EMB_SIZE, HID), 1.0 / (EMB_SIZE ** 0.5))
    b3 = u(ks[5], (1, HID), 1.0 / (EMB_SIZE ** 0.5))
    # decoder ConvTranspose1d(HID, C, k=P, stride=P): torch weight (HID, C, P)
    #   output patch = d1 @ W4, W4 (HID, C*P); bias broadcasts over positions.
    W4 = u(ks[6], (HID, NUM_CHANNELS * PATCH_SIZE), 1.0 / (HID ** 0.5))
    b4_c = u(ks[7], (NUM_CHANNELS,), 1.0 / (HID ** 0.5))
    b4 = jnp.tile(b4_c[:, None], (1, PATCH_SIZE)).reshape(1, NUM_CHANNELS * PATCH_SIZE)
    return (W1, b1, W2, b2, W3, b3, W4, b4)


# ----- plain-JAX reference (same matmul formulation) for a sanity check -----
def reference_forward(x, params):
    W1, b1, W2, b2, W3, b3, W4, b4 = params
    B, C, L = x.shape
    T = L // PATCH_SIZE
    xt = (x[:, :, :T * PATCH_SIZE].reshape(B, C, T, PATCH_SIZE)
          .transpose(0, 2, 1, 3).reshape(B * T, C * PATCH_SIZE))
    h1 = jnp.maximum(xt @ W1 + b1, 0.0)
    z = jnp.maximum(h1 @ W2 + b2, 0.0)
    d1 = jnp.maximum(z @ W3 + b3, 0.0)
    rec = d1 @ W4 + b4
    x_rec = (rec.reshape(B, T, C, PATCH_SIZE).transpose(0, 2, 1, 3)
             .reshape(B, C, T * PATCH_SIZE))
    z_out = z.reshape(B, T, EMB_SIZE).transpose(0, 2, 1)
    return x_rec, z_out


if __name__ == "__main__":
    key = jax.random.PRNGKey(0)
    pkey, k1, k2 = jax.random.split(key, 3)
    params = init_params(pkey)

    # Test 1: module-default style input (batch=2, channels=1, length=125 -> T=5).
    B1, L1 = 2, 5 * PATCH_SIZE
    x1 = jax.random.normal(k1, (B1, NUM_CHANNELS, L1), jnp.float32)
    rec1, z1 = autoencoder_forward(x1, params)
    jax.block_until_ready((rec1, z1))
    rec1_ref, z1_ref = reference_forward(x1, params)
    assert rec1.shape == (B1, NUM_CHANNELS, L1)
    assert z1.shape == (B1, EMB_SIZE, L1 // PATCH_SIZE)
    assert jnp.allclose(rec1, rec1_ref, atol=2e-4, rtol=2e-4)
    assert jnp.allclose(z1, z1_ref, atol=2e-4, rtol=2e-4)

    # Test 2: single-batch longer sequence (T=300) -> exercises the general
    # tiled path: >= 2 parallel grid steps (megacore) + masked edge block.
    B2, T2 = 1, 300
    L2 = T2 * PATCH_SIZE
    x2 = jax.random.normal(k2, (B2, NUM_CHANNELS, L2), jnp.float32)
    rec2, z2 = autoencoder_forward(x2, params)
    jax.block_until_ready((rec2, z2))
    rec2_ref, z2_ref = reference_forward(x2, params)
    assert rec2.shape == (B2, NUM_CHANNELS, L2)
    assert z2.shape == (B2, EMB_SIZE, T2)
    assert jnp.allclose(rec2, rec2_ref, atol=2e-4, rtol=2e-4)
    assert jnp.allclose(z2, z2_ref, atol=2e-4, rtol=2e-4)

    print("KERNEL_OK")
</pallas_src>

<mosaic_0001>
module attributes {stable_mosaic.version = 11 : i64} {
  func.func @_autoencoder_kernel(%arg0: i32, %arg1: i32, %arg2: memref<1x8x25xf32, #tpu.memory_space<vmem>>, %arg3: memref<25x64xf32, #tpu.memory_space<vmem>>, %arg4: memref<1x64xf32, #tpu.memory_space<vmem>>, %arg5: memref<64x256xf32, #tpu.memory_space<vmem>>, %arg6: memref<1x256xf32, #tpu.memory_space<vmem>>, %arg7: memref<256x64xf32, #tpu.memory_space<vmem>>, %arg8: memref<1x64xf32, #tpu.memory_space<vmem>>, %arg9: memref<64x25xf32, #tpu.memory_space<vmem>>, %arg10: memref<1x25xf32, #tpu.memory_space<vmem>>, %arg11: memref<1x8x25xf32, #tpu.memory_space<vmem>>, %arg12: memref<1x256x8xf32, #tpu.memory_space<vmem>>) attributes {dimension_semantics = [#tpu.dimension_semantics<parallel>, #tpu.dimension_semantics<parallel>], iteration_bounds = array<i64: 2, 1>, scalar_prefetch = 0 : i64, scratch_operands = 0 : i64, tpu.core_type = #tpu.core_type<tc>, window_params = [{transform_indices = @transform_0, window_bounds = array<i64: 1, 8, 25>}, {pipeline_mode = #tpu.pipeline_mode<synchronous>, transform_indices = @transform_1, window_bounds = array<i64: 25, 64>}, {pipeline_mode = #tpu.pipeline_mode<synchronous>, transform_indices = @transform_2, window_bounds = array<i64: 1, 64>}, {pipeline_mode = #tpu.pipeline_mode<synchronous>, transform_indices = @transform_3, window_bounds = array<i64: 64, 256>}, {pipeline_mode = #tpu.pipeline_mode<synchronous>, transform_indices = @transform_4, window_bounds = array<i64: 1, 256>}, {pipeline_mode = #tpu.pipeline_mode<synchronous>, transform_indices = @transform_5, window_bounds = array<i64: 256, 64>}, {pipeline_mode = #tpu.pipeline_mode<synchronous>, transform_indices = @transform_6, window_bounds = array<i64: 1, 64>}, {pipeline_mode = #tpu.pipeline_mode<synchronous>, transform_indices = @transform_7, window_bounds = array<i64: 64, 25>}, {pipeline_mode = #tpu.pipeline_mode<synchronous>, transform_indices = @transform_8, window_bounds = array<i64: 1, 25>}, {transform_indices = @transform_9, window_bounds = array<i64: 1, 8, 25>}, {transform_indices = @transform_10, window_bounds = array<i64: 1, 256, 8>}]} {
    %c0 = arith.constant 0 : index
    %c0_0 = arith.constant 0 : index
    %c0_1 = arith.constant 0 : index
    %0 = vector.load %arg2[%c0, %c0_0, %c0_1] : memref<1x8x25xf32, #tpu.memory_space<vmem>>, vector<1x8x25xf32>
    %1 = vector.shape_cast %0 : vector<1x8x25xf32> to vector<8x25xf32>
    %c0_2 = arith.constant 0 : index
    %c0_3 = arith.constant 0 : index
    %2 = vector.load %arg3[%c0_2, %c0_3] : memref<25x64xf32, #tpu.memory_space<vmem>>, vector<25x64xf32>
    %cst = arith.constant dense<0.000000e+00> : vector<8x64xf32>
    %3 = tpu.matmul %1, %2, %cst {dimension_numbers = #tpu.dot_dimension_numbers<[1], [0], [0], [1], [0, 0, 1, 1], [], []>} : vector<8x25xf32>, vector<25x64xf32>, vector<8x64xf32> -> vector<8x64xf32>
    %c0_4 = arith.constant 0 : index
    %c0_5 = arith.constant 0 : index
    %4 = vector.load %arg4[%c0_4, %c0_5] : memref<1x64xf32, #tpu.memory_space<vmem>>, vector<1x64xf32>
    %5 = vector.broadcast %4 : vector<1x64xf32> to vector<8x64xf32>
    %6 = arith.addf %3, %5 : vector<8x64xf32>
    %cst_6 = arith.constant 0.000000e+00 : f32
    %7 = vector.broadcast %cst_6 : f32 to vector<8x64xf32>
    %8 = arith.maximumf %6, %7 : vector<8x64xf32>
    %c0_7 = arith.constant 0 : index
    %c0_8 = arith.constant 0 : index
    %9 = vector.load %arg5[%c0_7, %c0_8] : memref<64x256xf32, #tpu.memory_space<vmem>>, vector<64x256xf32>
    %cst_9 = arith.constant dense<0.000000e+00> : vector<8x256xf32>
    %10 = tpu.matmul %8, %9, %cst_9 {dimension_numbers = #tpu.dot_dimension_numbers<[1], [0], [0], [1], [0, 0, 1, 1], [], []>} : vector<8x64xf32>, vector<64x256xf32>, vector<8x256xf32> -> vector<8x256xf32>
    %c0_10 = arith.constant 0 : index
    %c0_11 = arith.constant 0 : index
    %11 = vector.load %arg6[%c0_10, %c0_11] : memref<1x256xf32, #tpu.memory_space<vmem>>, vector<1x256xf32>
    %12 = vector.broadcast %11 : vector<1x256xf32> to vector<8x256xf32>
    %13 = arith.addf %10, %12 : vector<8x256xf32>
    %cst_12 = arith.constant 0.000000e+00 : f32
    %14 = vector.broadcast %cst_12 : f32 to vector<8x256xf32>
    %15 = arith.maximumf %13, %14 : vector<8x256xf32>
    %16 = tpu.transpose %15, [1, 0] : vector<8x256xf32> -> vector<256x8xf32>
    %c0_13 = arith.constant 0 : index
    %c0_14 = arith.constant 0 : index
    %c0_15 = arith.constant 0 : index
    %17 = vector.load %arg12[%c0_13, %c0_14, %c0_15] : memref<1x256x8xf32, #tpu.memory_space<vmem>>, vector<1x256x8xf32>
    %18 = vector.shape_cast %17 : vector<1x256x8xf32> to vector<256x8xf32>
    %19 = vector.shape_cast %16 : vector<256x8xf32> to vector<1x256x8xf32>
    tpu.vector_store %arg12[%c0_13, %c0_14, %c0_15], %19 {strides = array<i32>} : memref<1x256x8xf32, #tpu.memory_space<vmem>>, vector<1x256x8xf32>,
    %c0_16 = arith.constant 0 : index
    %c0_17 = arith.constant 0 : index
    %20 = vector.load %arg7[%c0_16, %c0_17] : memref<256x64xf32, #tpu.memory_space<vmem>>, vector<256x64xf32>
    %cst_18 = arith.constant dense<0.000000e+00> : vector<8x64xf32>
    %21 = tpu.matmul %15, %20, %cst_18 {dimension_numbers = #tpu.dot_dimension_numbers<[1], [0], [0], [1], [0, 0, 1, 1], [], []>} : vector<8x256xf32>, vector<256x64xf32>, vector<8x64xf32> -> vector<8x64xf32>
    %c0_19 = arith.constant 0 : index
    %c0_20 = arith.constant 0 : index
    %22 = vector.load %arg8[%c0_19, %c0_20] : memref<1x64xf32, #tpu.memory_space<vmem>>, vector<1x64xf32>
    %23 = vector.broadcast %22 : vector<1x64xf32> to vector<8x64xf32>
    %24 = arith.addf %21, %23 : vector<8x64xf32>
    %cst_21 = arith.constant 0.000000e+00 : f32
    %25 = vector.broadcast %cst_21 : f32 to vector<8x64xf32>
    %26 = arith.maximumf %24, %25 : vector<8x64xf32>
    %c0_22 = arith.constant 0 : index
    %c0_23 = arith.constant 0 : index
    %27 = vector.load %arg9[%c0_22, %c0_23] : memref<64x25xf32, #tpu.memory_space<vmem>>, vector<64x25xf32>
    %cst_24 = arith.constant dense<0.000000e+00> : vector<8x25xf32>
    %28 = tpu.matmul %26, %27, %cst_24 {dimension_numbers = #tpu.dot_dimension_numbers<[1], [0], [0], [1], [0, 0, 1, 1], [], []>} : vector<8x64xf32>, vector<64x25xf32>, vector<8x25xf32> -> vector<8x25xf32>
    %c0_25 = arith.constant 0 : index
    %c0_26 = arith.constant 0 : index
    %29 = vector.load %arg10[%c0_25, %c0_26] : memref<1x25xf32, #tpu.memory_space<vmem>>, vector<1x25xf32>
    %30 = vector.broadcast %29 : vector<1x25xf32> to vector<8x25xf32>
    %31 = arith.addf %28, %30 : vector<8x25xf32>
    %c0_27 = arith.constant 0 : index
    %c0_28 = arith.constant 0 : index
    %c0_29 = arith.constant 0 : index
    %32 = vector.load %arg11[%c0_27, %c0_28, %c0_29] : memref<1x8x25xf32, #tpu.memory_space<vmem>>, vector<1x8x25xf32>
    %33 = vector.shape_cast %32 : vector<1x8x25xf32> to vector<8x25xf32>
    %34 = vector.shape_cast %31 : vector<8x25xf32> to vector<1x8x25xf32>
    tpu.vector_store %arg11[%c0_27, %c0_28, %c0_29], %34 {strides = array<i32>} : memref<1x8x25xf32, #tpu.memory_space<vmem>>, vector<1x8x25xf32>,
    return
  }
  func.func @transform_0(%arg0: i32, %arg1: i32) -> (i32, i32, i32) {
    %c0_i32 = arith.constant 0 : i32
    %c0_i32_0 = arith.constant 0 : i32
    return %arg0, %arg1, %c0_i32 : i32, i32, i32
  }
  func.func @transform_1(%arg0: i32, %arg1: i32) -> (i32, i32) {
    %c0_i32 = arith.constant 0 : i32
    %c0_i32_0 = arith.constant 0 : i32
    %c0_i32_1 = arith.constant 0 : i32
    return %c0_i32, %c0_i32_0 : i32, i32
  }
  func.func @transform_2(%arg0: i32, %arg1: i32) -> (i32, i32) {
    %c0_i32 = arith.constant 0 : i32
    %c0_i32_0 = arith.constant 0 : i32
    %c0_i32_1 = arith.constant 0 : i32
    return %c0_i32, %c0_i32_0 : i32, i32
  }
  func.func @transform_3(%arg0: i32, %arg1: i32) -> (i32, i32) {
    %c0_i32 = arith.constant 0 : i32
    %c0_i32_0 = arith.constant 0 : i32
    %c0_i32_1 = arith.constant 0 : i32
    return %c0_i32, %c0_i32_0 : i32, i32
  }
  func.func @transform_4(%arg0: i32, %arg1: i32) -> (i32, i32) {
    %c0_i32 = arith.constant 0 : i32
    %c0_i32_0 = arith.constant 0 : i32
    %c0_i32_1 = arith.constant 0 : i32
    return %c0_i32, %c0_i32_0 : i32, i32
  }
  func.func @transform_5(%arg0: i32, %arg1: i32) -> (i32, i32) {
    %c0_i32 = arith.constant 0 : i32
    %c0_i32_0 = arith.constant 0 : i32
    %c0_i32_1 = arith.constant 0 : i32
    return %c0_i32, %c0_i32_0 : i32, i32
  }
  func.func @transform_6(%arg0: i32, %arg1: i32) -> (i32, i32) {
    %c0_i32 = arith.constant 0 : i32
    %c0_i32_0 = arith.constant 0 : i32
    %c0_i32_1 = arith.constant 0 : i32
    return %c0_i32, %c0_i32_0 : i32, i32
  }
  func.func @transform_7(%arg0: i32, %arg1: i32) -> (i32, i32) {
    %c0_i32 = arith.constant 0 : i32
    %c0_i32_0 = arith.constant 0 : i32
    %c0_i32_1 = arith.constant 0 : i32
    return %c0_i32, %c0_i32_0 : i32, i32
  }
  func.func @transform_8(%arg0: i32, %arg1: i32) -> (i32, i32) {
    %c0_i32 = arith.constant 0 : i32
    %c0_i32_0 = arith.constant 0 : i32
    %c0_i32_1 = arith.constant 0 : i32
    return %c0_i32, %c0_i32_0 : i32, i32
  }
  func.func @transform_9(%arg0: i32, %arg1: i32) -> (i32, i32, i32) {
    %c0_i32 = arith.constant 0 : i32
    %c0_i32_0 = arith.constant 0 : i32
    return %arg0, %arg1, %c0_i32 : i32, i32, i32
  }
  func.func @transform_10(%arg0: i32, %arg1: i32) -> (i32, i32, i32) {
    %c0_i32 = arith.constant 0 : i32
    %c0_i32_0 = arith.constant 0 : i32
    return %arg0, %c0_i32, %arg1 : i32, i32, i32
  }
}

</mosaic_0001>

<bundles_post_ra>
// kernel: tpu_custom_call.1
= control target key start
LH: loop header
LB: loop body
LE: loop exit
PB: predicated region body
PF: predicated region fallthrough
CT: control target
= control target key end

     0   :  { %s1710_s0 = inlined_call_operand.vmem [shape: f32[2,8,25], index: 0, kind: input, shape index: {}]   ;;  %s1711_s1 = inlined_call_operand.vmem [shape: f32[25,64], index: 1, kind: input, shape index: {}]   ;;  %s1712_s2 = inlined_call_operand.vmem [shape: f32[1,64], index: 2, kind: input, shape index: {}]   ;;  %s1713_s3 = inlined_call_operand.vmem [shape: f32[64,256], index: 3, kind: input, shape index: {}]   ;;  %s1714_s4 = inlined_call_operand.vmem [shape: f32[1,256], index: 4, kind: input, shape index: {}]   ;;  %s1715_s5 = inlined_call_operand.vmem [shape: f32[256,64], index: 5, kind: input, shape index: {}]   ;;  %s1716_s6 = inlined_call_operand.vmem [shape: f32[1,64], index: 6, kind: input, shape index: {}]   ;;  %s1717_s7 = inlined_call_operand.vmem [shape: f32[64,25], index: 7, kind: input, shape index: {}]   ;;  %s1718_s8 = inlined_call_operand.vmem [shape: f32[1,25], index: 8, kind: input, shape index: {}]   ;;  %s1719_s9 = inlined_call_operand.hbm [shape: f32[2,8,25], index: 9, kind: output, shape index: {0}]   ;;  %s1720_s10 = inlined_call_operand.vmem [shape: f32[2,256,8], index: 10, kind: output, shape index: {1}]  }
   0x1   :  { %1722 = sst [smem:[#allocation6_spill]] %s1710_s0 }
   0x2   :  { %16 = vsyncpa [#allocation3], 0 }
   0x3   :  { %18 = vsyncpa [#allocation3 + $0x1], 0  ;;  %s1319_s13 = smov 0   ;;  %s1321_s14 = smov 0  }
   0x4   :  { %s1323_s15 = smov 0   ;;  %s1325_s16 = smov 0  }
   0x5   :  { %s1327_s17 = smov 0   ;;  %s1329_s18 = smov 0  }
   0x6 LB: > { %s1026_s19 = sadd.s32 4294967295, %s1259_s18   ;;  %s1027_s20 = sadd.s32 4294967294, %s1259_s18   ;;  %s1259_s18 = sphi %s1329_s18, %s24_s18   ;;  %s1255_s17 = sphi %s1327_s17, %s1732_s17   ;;  %s1251_s16 = sphi %s1325_s16, %s1731_s16   ;;  %s1247_s15 = sphi %s1323_s15, %s1730_s15   ;;  %s1243_s14 = sphi %s1321_s14, %s1729_s14   ;;  %s1239_s13 = sphi %s1319_s13, %s1728_s13  }
   0x7   : > { %s36_s21 = sadd.s32 1, %s1255_s17  ;;  %s241_s22 = sadd.s32 1, %s1247_s15 }
   0x8   : > { %p38_p0 = scmp.ge.s32.totalorder %s36_s21, 2  ;;  %p251_p1 = scmp.ne.s32.totalorder %s1247_s15, %s1243_s14 }
   0x9   : > { %p252_p2 = scmp.eq.s32.totalorder %s1026_s19, 1  ;;  %p257_p3 = scmp.ne.s32.totalorder %s1243_s14, %s1239_s13 }
   0xa   : > { %s1734_s21 = smov (%p38_p0, %s36_s21), 0  ;;  %p258_p5 = scmp.eq.s32.totalorder %s1027_s20, 1 }
   0xb   : > { %1723 = sst [smem:[#allocation5_spill]] %s1734_s21  ;;  %p1359_p4 = por %p252_p2, %p251_p1 }
   0xc   : > { %s236_s24 = ssub.s32 %s1255_s17, %s1734_s21  ;;  %p1030_p6 = scmp.ge.s32.totalorder %s1259_s18, 1 }
   0xd   : > { %p239_p7 = scmp.eq.s32.totalorder %s236_s24, 0  ;;  %p1366_p8 = por %p258_p5, %p257_p3 }
   0xe   : > { %p338_p9 = scmp.lt.s32.totalorder %s1259_s18, 3 }
   0xf   : > { %s1372_s26 = scalar_select %p239_p7, %s1247_s15, %s241_s22  }
  0x10   : > { %p339_p10 = pnand %p1030_p6, %p338_p9 }
  0x11   : > { %p386_p11 = scmp.lt.s32.totalorder (!%p339_p10), %s1251_s16, 1  ;;  %s1726_s0 = sld [smem:[#allocation6_spill]] (!%p339_p10) }
  0x12   : > { %342 = sbr.rel (%p339_p10) target bundleno = 838 (0x346), region = 56  ;;  %s373_s11 = sand.u32 (!%p339_p10), 1, %s1243_s14  }
  0x13   : > { %s1031_s12 = sshll.u32 (!%p339_p10), %s373_s11, 3  ;;  %s1043_s22 = sshll.u32 (!%p339_p10), %s1251_s16, 7 }
  0x17   : > { %v405_v0 = vld [vmem:[%s1711_s1 + $0x18] sm:$0x1]  ;;  %vm417_vm0 = vcmask 1040384   ;;  %v1261_v1 = vmov 0.0   ;;  %v404_v2 = vld [vmem:[%s1711_s1 + $0x10] sm:$0xff]  ;;  %vm1262_vm1 = vmmov 0   ;;  %v510_v62 = vlaneseq }
  0x18   : > { %1096 = vmatprep.subr.mxu0 %v1261_v1  ;;  %v507_v3 = vld [vmem:[%s1713_s3 + $0x78] sm:$0xff]  ;;  %v506_v4 = vld [vmem:[%s1713_s3 + $0x70] sm:$0xff]  ;;  %588 = vmatprep.mubr.f32.mxu1 %v1261_v1  ;;  %v505_v5 = vld [vmem:[%s1713_s3 + $0x68] sm:$0xff]  ;;  %s1399_s29 = scalar_select %p386_p11, %s1251_s16, 1  ;;  %vm413_vm2 = vcmask 203776   ;;  %vm520_vm3 = vcmask 523264  }
  0x19   : > { %1097 = vmatpush3.msk.msra.mxu0 %vm417_vm0, %v405_v0  ;;  %1104 = vmatprep.mubr.msk.f32.mxu0 %vm1262_vm1, %v1261_v1  ;;  %v403_v6 = vld [vmem:[%s1711_s1 + $0x8] sm:$0xff]  ;;  %v504_v7 = vld [vmem:[%s1713_s3 + $0x60] sm:$0xff]  ;;  %v503_v8 = vld [vmem:[%s1713_s3 + $0x58] sm:$0xff]  ;;  %v511_v63 = vshrl.u32 %v510_v62, 7  ;;  %vm661_vm4 = vcmask 64512   ;;  %s1263_s16 = smov [#allocation2]  }
  0x1a   : > { %1098 = vmatprep.subr.mxu0 %v1261_v1  ;;  %540 = vmatprep.subr.mxu1 %v507_v3  ;;  %v402_v9 = vld [vmem:[%s1711_s1] sm:$0xff]  ;;  %s1032_s24 = sshll.u32 %s1399_s29, 3  ;;  %v502_v10 = vld [vmem:[%s1713_s3 + $0x50] sm:$0xff]  ;;  %v501_v11 = vld [vmem:[%s1713_s3 + $0x48] sm:$0xff]  ;;  %s1046_s27 = sshll.u32 %s1399_s29, 8 }
  0x1b   : > { %1099 = vmatpush3.msra.mxu0 %v404_v2  ;;  %541 = vmatpush1.msra.mxu1 %v506_v4  ;;  %s392_s21 = scalar_lea.vmem %s1726_s0, %s1032_s24  ;;  %v500_v13 = vld [vmem:[%s1713_s3 + $0x40] sm:$0xff]  ;;  %v499_v14 = vld [vmem:[%s1713_s3 + $0x38] sm:$0xff]  ;;  %v498_v15 = vld [vmem:[%s1713_s3 + $0x30] sm:$0xff]  ;;  %v512_v0 = vsub.s32 0, %v511_v63  ;;  %v516_v3 = vsub.s32 1, %v511_v63  ;;  %s1591_s30 = scalar_lea.vmem %s1720_s10, %s1046_s27 }
  0x1c   : > { %1100 = vmatprep.subr.mxu0 %v1261_v1  ;;  %542 = vmatprep.subr.mxu1 %v505_v5  ;;  %v401_v12 = vld [vmem:[%s392_s21] sm:$0xff]  ;;  %v497_v16 = vld [vmem:[%s1713_s3 + $0x28] sm:$0xff]  ;;  %v495_v18 = vld [vmem:[%s1713_s3 + $0x18] sm:$0xff]  ;;  %s375_s27 = scalar_lea.vmem [#allocation2], %s1031_s12  ;;  %s1669_s21 = scalar_lea.hbm %s1719_s9, %s1043_s22 }
  0x1d   : > { %1101 = vmatpush3.msra.mxu0 %v403_v6  ;;  %543 = vmatpush1.msra.mxu1 %v504_v7  ;;  %v496_v17 = vld [vmem:[%s1713_s3 + $0x20] sm:$0xff]  ;;  %v494_v19 = vld [vmem:[%s1713_s3 + $0x10] sm:$0xff]  ;;  %v493_v20 = vld [vmem:[%s1713_s3 + $0x8] sm:$0xff]  ;;  %s916_s28 = sshll.u32 %s375_s27, 4  ;;  %s1187_s12 = sshll.u32 %s1263_s16, 4  ;;  %s917_s28 = int_to_ptr.vmem [resolvable:$true] %s916_s28  ;;  %s1188_s12 = int_to_ptr.vmem [resolvable:$false] %s1187_s12 }
  0x1e   : > { %1102 = vmatprep.subr.mxu0 %v1261_v1  ;;  %544 = vmatprep.subr.mxu1 %v503_v8  ;;  %v492_v21 = vld [vmem:[%s1713_s3] sm:$0xff]  ;;  %v725_v22 = vld [vmem:[%s1715_s5 + $0xf8] sm:$0xff]  ;;  %v724_v24 = vld [vmem:[%s1715_s5 + $0xf0] sm:$0xff]  ;;  %s1183_s0 = scalar_lea.vmem %s917_s28, 128  ;;  %s1189_s19 = scalar_lea.vmem %s1188_s12, 256 }
  0x1f   : > { %1103 = vmatpush3.msra.mxu0 %v402_v9  ;;  %545 = vmatpush1.msra.mxu1 %v502_v10  ;;  %v709_v23 = vld [vmem:[%s1715_s5 + $0x78] sm:$0xff]  ;;  %v708_v25 = vld [vmem:[%s1715_s5 + $0x70] sm:$0xff]  ;;  %v723_v26 = vld [vmem:[%s1715_s5 + $0xe8] sm:$0xff]  ;;  %p1184_p12 = scmp.ne.s32.totalorder %s917_s28, %s1183_s0  ;;  %p1190_p1 = scmp.lt.s32.totalorder %s917_s28, %s1188_s12 }
  0x20   : > { %1105 = vmatmul.mubr.msk.f32.vlgmr.msra.gmra.mxu0 %vm413_vm2, %v401_v12  ;;  %546 = vmatprep.subr.mxu1 %v501_v11  ;;  %v707_v27 = vld [vmem:[%s1715_s5 + $0x68] sm:$0xff]  ;;  %v722_v28 = vld [vmem:[%s1715_s5 + $0xe0] sm:$0xff]  ;;  %v721_v30 = vld [vmem:[%s1715_s5 + $0xd8] sm:$0xff]  ;;  %p1191_p2 = scmp.lt.s32.totalorder %s1189_s19, %s1183_s0 }
  0x21   : > { %547 = vmatpush1.msra.mxu1 %v500_v13  ;;  %1052 = vmatprep.subr.mxu0 %v725_v22  ;;  %v706_v29 = vld [vmem:[%s1715_s5 + $0x60] sm:$0xff]  ;;  %v705_v31 = vld [vmem:[%s1715_s5 + $0x58] sm:$0xff]  ;;  %v720_v32 = vld [vmem:[%s1715_s5 + $0xd0] sm:$0xff]  ;;  %p1185_p13 = pnand %p1184_p12, %p1359_p4 }
  0x22   : > { %548 = vmatprep.subr.mxu1 %v499_v14  ;;  %1053 = vmatpush3.msra.mxu0 %v709_v23  ;;  %v704_v33 = vld [vmem:[%s1715_s5 + $0x50] sm:$0xff]  ;;  %v719_v34 = vld [vmem:[%s1715_s5 + $0xc8] sm:$0xff]  ;;  %v718_v36 = vld [vmem:[%s1715_s5 + $0xc0] sm:$0xff]  ;;  %p1192_p3 = por %p1191_p2, %p1190_p1 }
  0x23   : > { %549 = vmatpush1.msra.mxu1 %v498_v15  ;;  %1054 = vmatprep.subr.mxu0 %v724_v24  ;;  %v703_v35 = vld [vmem:[%s1715_s5 + $0x48] sm:$0xff]  ;;  %v702_v37 = vld [vmem:[%s1715_s5 + $0x40] sm:$0xff]  ;;  %v717_v38 = vld [vmem:[%s1715_s5 + $0xb8] sm:$0xff]  ;;  %p1186_p0 = pneg %p1185_p13 }
  0x24   : > { %550 = vmatprep.subr.mxu1 %v497_v16  ;;  %1055 = vmatpush3.msra.mxu0 %v708_v25  ;;  %v701_v39 = vld [vmem:[%s1715_s5 + $0x38] sm:$0xff]  ;;  %v716_v40 = vld [vmem:[%s1715_s5 + $0xb0] sm:$0xff]  ;;  %v715_v42 = vld [vmem:[%s1715_s5 + $0xa8] sm:$0xff] }
  0x25   : > { %551 = vmatpush1.msra.mxu1 %v496_v17  ;;  %1056 = vmatprep.subr.mxu0 %v723_v26  ;;  %v700_v41 = vld [vmem:[%s1715_s5 + $0x30] sm:$0xff]  ;;  %v699_v43 = vld [vmem:[%s1715_s5 + $0x28] sm:$0xff]  ;;  %v714_v44 = vld [vmem:[%s1715_s5 + $0xa0] sm:$0xff]  ;;  %p1193_p5 = pnand %p1192_p3, %p1186_p0 }
  0x26   : > { %552 = vmatprep.subr.mxu1 %v495_v18  ;;  %1057 = vmatpush3.msra.mxu0 %v707_v27  ;;  %v698_v45 = vld [vmem:[%s1715_s5 + $0x20] sm:$0xff]  ;;  %v713_v51 = vld [vmem:[%s1715_s5 + $0x98] sm:$0xff]  ;;  %v712_v53 = vld [vmem:[%s1715_s5 + $0x90] sm:$0xff] }
  0x27   : > { %553 = vmatpush1.msra.mxu1 %v494_v19  ;;  %1058 = vmatprep.subr.mxu0 %v722_v28  ;;  %v1035_v46 = vld [vmem:[%s1712_s2] ss:$0 sm:$0xff]  ;;  %v697_v52 = vld [vmem:[%s1715_s5 + $0x18] sm:$0xff]  ;;  %v696_v54 = vld [vmem:[%s1715_s5 + $0x10] sm:$0xff] }
  0x28   : > { %554 = vmatprep.subr.mxu1 %v493_v20  ;;  %1059 = vmatpush3.msra.mxu0 %v706_v29  ;;  %v711_v55 = vld [vmem:[%s1715_s5 + $0x88] sm:$0xff]  ;;  %v710_v57 = vld [vmem:[%s1715_s5 + $0x80] sm:$0xff]  ;;  %v811_v59 = vld [vmem:[%s1717_s7 + $0x38] sm:$0xff] }
  0x29   : > { %555 = vmatpush1.msra.mxu1 %v492_v21  ;;  %1060 = vmatprep.subr.mxu0 %v721_v30  ;;  %v695_v56 = vld [vmem:[%s1715_s5 + $0x8] sm:$0xff]  ;;  %v694_v58 = vld [vmem:[%s1715_s5] sm:$0xff]  ;;  %v810_v60 = vld [vmem:[%s1717_s7 + $0x30] sm:$0xff] }
  0x2a   : > { %1107 = vmatprep.subr.mxu1 %v1261_v1  ;;  %1061 = vmatpush3.msra.mxu0 %v705_v31  ;;  %v809_v61 = vld [vmem:[%s1717_s7 + $0x28] sm:$0xff]  ;;  %v508_v2 = vld [vmem:[%s1714_s4] sm:$0x3]  ;;  %v807_v13 = vld [vmem:[%s1717_s7 + $0x18] sm:$0xff] }
  0x2b   : > { %1062 = vmatprep.subr.mxu0 %v720_v32  ;;  %v513_v4 = vrot.slane %v508_v2, %v512_v0  ;;  %v517_v5 = vrot.slane %v508_v2, %v516_v3  ;;  %v808_v12 = vld [vmem:[%s1717_s7 + $0x20] sm:$0xff]  ;;  %v806_v14 = vld [vmem:[%s1717_s7 + $0x10] sm:$0xff]  ;;  %v805_v15 = vld [vmem:[%s1717_s7 + $0x8] sm:$0xff] }
  0x2c   : > { %1063 = vmatpush3.msra.mxu0 %v704_v33  ;;  %v804_v16 = vld [vmem:[%s1717_s7] sm:$0xff] }
  0x2d   : > { %1064 = vmatprep.subr.mxu0 %v719_v34 }
  0x2e   : > { %1065 = vmatpush3.msra.mxu0 %v703_v35 }
  0x2f   : > { %1066 = vmatprep.subr.mxu0 %v718_v36  ;;  %v1039_v36 = vld [vmem:[%s1716_s6] ss:$0 sm:$0xff] }
  0x30   : > { %1067 = vmatpush3.msra.mxu0 %v702_v37 }
  0x31   : > { %1068 = vmatprep.subr.mxu0 %v717_v38 }
  0x32   : > { %1069 = vmatpush3.msra.mxu0 %v701_v39 }
  0x33   : > { %1070 = vmatprep.subr.mxu0 %v716_v40 }
  0x34   : > { %1071 = vmatpush3.msra.mxu0 %v700_v41 }
  0x35   : > { %1072 = vmatprep.subr.mxu0 %v715_v42 }
  0x36   : > { %1073 = vmatpush3.msra.mxu0 %v699_v43 }
  0x37   : > { %1074 = vmatprep.subr.mxu0 %v714_v44 }
  0x38   : > { %1075 = vmatpush3.msra.mxu0 %v698_v45 }
  0x39   : > { %1076 = vmatprep.subr.mxu0 %v713_v51 }
  0x3a   : > { %1077 = vmatpush3.msra.mxu0 %v697_v52 }
  0x3b   : > { %1078 = vmatprep.subr.mxu0 %v712_v53 }
  0x3c   : > { %1079 = vmatpush3.msra.mxu0 %v696_v54  ;;  %v1040_v54 = vld [vmem:[%s1718_s8] ss:$0 sm:$0xff] }
  0x3d   : > { %1080 = vmatprep.subr.mxu0 %v711_v55 }
  0x3e   : > { %1081 = vmatpush3.msra.mxu0 %v695_v56 }
  0x3f   : > { %1082 = vmatprep.subr.mxu0 %v710_v57 }
  0x40   : > { %1083 = vmatpush3.msra.mxu0 %v694_v58 }
  0xe0   : > { %v487_v47 = vpop.f32.mrf.mxu0 }
  0xe1   : > { %v488_v48 = vadd.f32 %v1035_v46, %v487_v47 }
  0xe2   : > { %v1106_v49 = vpop.f32.mrf.mxu0 }
  0xe3   : > { %v491_v50 = vmax.f32 %v488_v48, 0.0 }
  0xe5   : > { %1038 = vmatmul.mubr.msk.f32.vlgmr.msra.gmra.mxu1 %vm520_vm3, %v491_v50 }
  0xe6   : > { %1123 = vmatprep.mubr.msk.f32.mxu1 %vm1262_vm1, %v1261_v1  ;;  %1108 = vmatpush3.msra.mxu1 %v811_v59 }
  0xe7   : > { %1109 = vmatprep.subr.mxu1 %v1261_v1 }
  0xe8   : > { %1110 = vmatpush3.msra.mxu1 %v810_v60 }
  0xe9   : > { %1111 = vmatprep.subr.mxu1 %v1261_v1 }
  0xea   : > { %1112 = vmatpush3.msra.mxu1 %v809_v61 }
  0xeb   : > { %1113 = vmatprep.subr.mxu1 %v1261_v1 }
  0xec   : > { %1114 = vmatpush3.msra.mxu1 %v808_v12 }
  0xed   : > { %1115 = vmatprep.subr.mxu1 %v1261_v1 }
  0xee   : > { %1116 = vmatpush3.msra.mxu1 %v807_v13 }
  0xef   : > { %1117 = vmatprep.subr.mxu1 %v1261_v1 }
  0xf0   : > { %1118 = vmatpush3.msra.mxu1 %v806_v14 }
  0xf1   : > { %1119 = vmatprep.subr.mxu1 %v1261_v1 }
  0xf2   : > { %1120 = vmatpush3.msra.mxu1 %v805_v15 }
  0xf3   : > { %1121 = vmatprep.subr.mxu1 %v1261_v1 }
  0xf4   : > { %1122 = vmatpush3.msra.mxu1 %v804_v16 }
 0x1a5   : > { %v590_v6 = vpop.f32.mrf.mxu1 }
 0x1a6   : > { %v591_v7 = vadd.f32 %v590_v6, %v513_v4 }
 0x1a7   : > { %v592_v8 = vpop.f32.mrf.mxu1 }
 0x1a8   : > { %v595_v9 = vmax.f32 %v591_v7, 0.0  ;;  %v593_v10 = vadd.f32 %v592_v8, %v517_v5 }
 0x1aa   : > { %v596_v11 = vmax.f32 %v593_v10, 0.0  ;;  %597 = vxpose.xlu0.b32.start.end [1/1] (short) %v595_v9, 128 }
 0x1ac   : > { %797 = vmatprep.mubr.f32.mxu0 %v596_v11 }
 0x1ad   : > { %798 = vmatmul.mubr.f32.vlgmr.msra.gmra.mxu0 %v595_v9 }
 0x1e7   : > { %629 = vxpose.xlu0.b32.start.end [1/1] (short) %v596_v11, 128 }
 0x226   : > { %v613_v1 = vpop.trf.xlu0 }
 0x227   : > { %662 = vst.msk [vmem:[%s1591_s30] sm:$0xff] %vm661_vm4, %v613_v1 }
 0x22a   : > { %v614_v17 = vpop.trf.xlu0 }
 0x22b   : > { %663 = vst.msk [vmem:[%s1591_s30 + $0x8] sm:$0xff] %vm661_vm4, %v614_v17 }
 0x22e   : > { %v615_v18 = vpop.trf.xlu0 }
 0x22f   : > { %664 = vst.msk [vmem:[%s1591_s30 + $0x10] sm:$0xff] %vm661_vm4, %v615_v18 }
 0x232   : > { %v616_v19 = vpop.trf.xlu0 }
 0x233   : > { %665 = vst.msk [vmem:[%s1591_s30 + $0x18] sm:$0xff] %vm661_vm4, %v616_v19 }
 0x236   : > { %v617_v20 = vpop.trf.xlu0 }
 0x237   : > { %666 = vst.msk [vmem:[%s1591_s30 + $0x20] sm:$0xff] %vm661_vm4, %v617_v20 }
 0x23a   : > { %v618_v21 = vpop.trf.xlu0 }
 0x23b   : > { %667 = vst.msk [vmem:[%s1591_s30 + $0x28] sm:$0xff] %vm661_vm4, %v618_v21 }
 0x23e   : > { %v619_v22 = vpop.trf.xlu0 }
 0x23f   : > { %668 = vst.msk [vmem:[%s1591_s30 + $0x30] sm:$0xff] %vm661_vm4, %v619_v22 }
 0x242   : > { %v620_v23 = vpop.trf.xlu0 }
 0x243   : > { %669 = vst.msk [vmem:[%s1591_s30 + $0x38] sm:$0xff] %vm661_vm4, %v620_v23 }
 0x246   : > { %v621_v24 = vpop.trf.xlu0 }
 0x247   : > { %670 = vst.msk [vmem:[%s1591_s30 + $0x40] sm:$0xff] %vm661_vm4, %v621_v24 }
 0x24a   : > { %v622_v25 = vpop.trf.xlu0 }
 0x24b   : > { %671 = vst.msk [vmem:[%s1591_s30 + $0x48] sm:$0xff] %vm661_vm4, %v622_v25 }
 0x24e   : > { %v623_v26 = vpop.trf.xlu0 }
 0x24f   : > { %672 = vst.msk [vmem:[%s1591_s30 + $0x50] sm:$0xff] %vm661_vm4, %v623_v26 }
 0x252   : > { %v624_v27 = vpop.trf.xlu0 }
 0x253   : > { %673 = vst.msk [vmem:[%s1591_s30 + $0x58] sm:$0xff] %vm661_vm4, %v624_v27 }
 0x256   : > { %v625_v28 = vpop.trf.xlu0 }
 0x257   : > { %674 = vst.msk [vmem:[%s1591_s30 + $0x60] sm:$0xff] %vm661_vm4, %v625_v28 }
 0x25a   : > { %v626_v29 = vpop.trf.xlu0 }
 0x25b   : > { %675 = vst.msk [vmem:[%s1591_s30 + $0x68] sm:$0xff] %vm661_vm4, %v626_v29 }
 0x25e   : > { %v627_v30 = vpop.trf.xlu0 }
 0x25f   : > { %676 = vst.msk [vmem:[%s1591_s30 + $0x70] sm:$0xff] %vm661_vm4, %v627_v30 }
 0x262   : > { %v628_v31 = vpop.trf.xlu0 }
 0x263   : > { %677 = vst.msk [vmem:[%s1591_s30 + $0x78] sm:$0xff] %vm661_vm4, %v628_v31 }
 0x266   : > { %v645_v32 = vpop.trf.xlu0 }
 0x267   : > { %678 = vst.msk [vmem:[%s1591_s30 + $0x80] sm:$0xff] %vm661_vm4, %v645_v32 }
 0x26a   : > { %v646_v33 = vpop.trf.xlu0 }
 0x26b   : > { %679 = vst.msk [vmem:[%s1591_s30 + $0x88] sm:$0xff] %vm661_vm4, %v646_v33 }
 0x26d   : > { %v1084_v34 = vpop.f32.mrf.mxu0 }
 0x26e   : > { %v647_v35 = vpop.trf.xlu0 }
 0x26f   : > { %v1085_v37 = vpop.f32.mrf.mxu0  ;;  %680 = vst.msk [vmem:[%s1591_s30 + $0x90] sm:$0xff] %vm661_vm4, %v647_v35 }
 0x270   : > { %v1086_v38 = vadd.f32 %v1085_v37, %v1084_v34 }
 0x272   : > { %v800_v39 = vadd.f32 %v1086_v38, %v1039_v36  ;;  %v648_v40 = vpop.trf.xlu0 }
 0x273   : > { %681 = vst.msk [vmem:[%s1591_s30 + $0x98] sm:$0xff] %vm661_vm4, %v648_v40 }
 0x274   : > { %v803_v41 = vmax.f32 %v800_v39, 0.0 }
 0x276   : > { %1124 = vmatmul.mubr.msk.f32.vlgmr.msra.gmra.mxu1 %vm520_vm3, %v803_v41  ;;  %v649_v42 = vpop.trf.xlu0 }
 0x277   : > { %682 = vst.msk [vmem:[%s1591_s30 + $0xa0] sm:$0xff] %vm661_vm4, %v649_v42 }
 0x27a   : > { %v650_v43 = vpop.trf.xlu0 }
 0x27b   : > { %683 = vst.msk [vmem:[%s1591_s30 + $0xa8] sm:$0xff] %vm661_vm4, %v650_v43 }
 0x27e   : > { %v651_v44 = vpop.trf.xlu0 }
 0x27f   : > { %684 = vst.msk [vmem:[%s1591_s30 + $0xb0] sm:$0xff] %vm661_vm4, %v651_v44 }
 0x282   : > { %v652_v45 = vpop.trf.xlu0 }
 0x283   : > { %685 = vst.msk [vmem:[%s1591_s30 + $0xb8] sm:$0xff] %vm661_vm4, %v652_v45 }
 0x286   : > { %v653_v46 = vpop.trf.xlu0 }
 0x287   : > { %686 = vst.msk [vmem:[%s1591_s30 + $0xc0] sm:$0xff] %vm661_vm4, %v653_v46 }
 0x28a   : > { %v654_v47 = vpop.trf.xlu0 }
 0x28b   : > { %687 = vst.msk [vmem:[%s1591_s30 + $0xc8] sm:$0xff] %vm661_vm4, %v654_v47 }
 0x28e   : > { %v655_v48 = vpop.trf.xlu0 }
 0x28f   : > { %688 = vst.msk [vmem:[%s1591_s30 + $0xd0] sm:$0xff] %vm661_vm4, %v655_v48 }
 0x292   : > { %v656_v49 = vpop.trf.xlu0 }
 0x293   : > { %689 = vst.msk [vmem:[%s1591_s30 + $0xd8] sm:$0xff] %vm661_vm4, %v656_v49 }
 0x296   : > { %v657_v50 = vpop.trf.xlu0 }
 0x297   : > { %690 = vst.msk [vmem:[%s1591_s30 + $0xe0] sm:$0xff] %vm661_vm4, %v657_v50 }
 0x29a   : > { %v658_v51 = vpop.trf.xlu0 }
 0x29b   : > { %691 = vst.msk [vmem:[%s1591_s30 + $0xe8] sm:$0xff] %vm661_vm4, %v658_v51 }
 0x29e   : > { %v659_v52 = vpop.trf.xlu0 }
 0x29f   : > { %692 = vst.msk [vmem:[%s1591_s30 + $0xf0] sm:$0xff] %vm661_vm4, %v659_v52 }
 0x2a2   : > { %v660_v53 = vpop.trf.xlu0 }
 0x2a3   : > { %693 = vst.msk [vmem:[%s1591_s30 + $0xf8] sm:$0xff] %vm661_vm4, %v660_v53  ;;  %s894_s30 = scalar_lea.sflag [#allocation3], %s373_s11 }
 0x336   : > { %v888_v55 = vpop.f32.mrf.mxu1 }
 0x337   : > { %v889_v56 = vadd.f32 %v1040_v54, %v888_v55 }
 0x338   : > { %v1125_v57 = vpop.f32.mrf.mxu1 }
 0x339   : > { %892 = vst.msk [vmem:[%s375_s27] sm:$0xff] %vm413_vm2, %v889_v56 }
 0x33a   : > { %1196 = shalt.err (!%p1193_p5)
}
 0x33b   : > { %s1197_s20 = scalar_lea.hbm %s1669_s21, 128  ;;  %s1201_s27 = scalar_lea.hbm %s1719_s9, 256 }
 0x33c   : > { %p1198_p6 = scmp.ne.s32.totalorder %s1669_s21, %s1197_s20  ;;  %p1202_p10 = scmp.lt.s32.totalorder %s1669_s21, %s1719_s9 }
 0x33d   : > { %p1203_p11 = scmp.lt.s32.totalorder %s1201_s27, %s1197_s20 }
 0x33e   : > { %p1199_p7 = pnand %p1198_p6, %p1359_p4 }
 0x33f   : > { %p1204_p12 = por %p1203_p11, %p1202_p10 }
 0x340   : > { %p1200_p9 = pneg %p1199_p7 }
 0x342   : > { %p1205_p13 = pnand %p1204_p12, %p1200_p9 }
 0x344   : > { %1208 = shalt.err (!%p1205_p13)
}
 0x345   : > { %1126 = dma.vmem_to_hbm [thread:$0]  (%p1359_p4), %s917_s28, 128, %s1669_s21, %s894_s30  }
 0x346 PF: > { %p1132_p0 = scmp.ge.s32.totalorder %s1259_s18, 2  ;;  %s931_s0 = sand.u32 1, %s1239_s13  }
 0x347   : > { %s932_s16 = scalar_lea.sflag [#allocation3], %s931_s0 }
 0x348   : > { %p1129_p1 = pnand %p1132_p0, %p1366_p8 }
 0x34a   : > { %p1130_p2 = pneg %p1129_p1 }
 0x34c   : > { %1234 = dma.done.wait (%p1130_p2), %s932_s16, 128  }
 0x34d   : > { %1236 = vsyncadd (%p1130_p2), %s932_s16, 4294967168  ;;  %s24_s18 = sadd.s32 1, %s1259_s18   ;;  %s1727_s23 = sld [smem:[#allocation5_spill]] }
 0x34e   : > { %p21_p3 = scmp.ge.s32.totalorder %s24_s18, 4   ;;  %s1728_s13 = smov %s1243_s14 }
 0x34f   : > { %s1729_s14 = smov %s1247_s15  ;;  %s1730_s15 = smov %s1372_s26 }
 0x350   : > { %s1731_s16 = smov %s1255_s17  ;;  %23 = sbr.rel (!%p21_p3) target bundleno = 6 (0x6), region = 103 }
 0x353   : > { %s1732_s17 = smov %s1727_s23 }
 0x355   :  { %948 = vsyncpa [#allocation3], 1 }
 0x356   :  { %950 = vsyncpa [#allocation3 + $0x1], 1 }

</bundles_post_ra>
